<compile_context>
chip_gen: v7x
topology: tpu7x:2x2x1
jax: 0.10.0
libtpu: 0.0.40
codegen_flags: <defaults>
</compile_context>

<pallas_src>
import functools

import jax
import jax.numpy as jnp
import numpy as np
from jax import lax
from jax.experimental import pallas as pl
from jax.experimental.pallas import tpu as pltpu


# ---------------------------------------------------------------------------
# helpers
# ---------------------------------------------------------------------------

def _itemsize(dt):
    return np.dtype(jax.dtypes.canonicalize_dtype(dt)).itemsize


def _chip_vmem_bytes():
    """Per-TensorCore VMEM capacity; conservative 64 MiB (v7x) if unknown."""
    try:
        return int(pltpu.get_tpu_info().vmem_capacity_bytes)
    except Exception:
        return 64 << 20


def _vmem_limit_bytes(need_bytes, chip_vmem):
    hi = max(32 << 20, min(chip_vmem - (16 << 20), 100 << 20))
    return int(min(max(need_bytes + (8 << 20), 32 << 20), hi))


def _tile_and_pad(dim, pref):
    """Return (tile, padded_dim). Keeps MXU-shaped tiles (multiple of 128,
    <= pref) for big dims instead of falling back to a full-dim panel; small
    dims use a single full-extent block (always legal)."""
    if dim <= pref:
        return dim, dim
    t = (pref // 128) * 128
    for cand in range(t, 127, -128):          # prefer a divisor -> no padding
        if dim % cand == 0:
            return cand, dim
    padded = ((dim + t - 1) // t) * t         # else pad up to tile multiple
    return t, padded


# ---------------------------------------------------------------------------
# (1)/(3)  big parallel matmul + bias:  out = x @ w + b
# ---------------------------------------------------------------------------

def _matmul_bias_kernel(x_ref, w_ref, b_ref, o_ref, acc_ref):
    @pl.when(pl.program_id(2) == 0)
    def _():
        acc_ref[...] = jnp.zeros_like(acc_ref)

    acc_ref[...] += jnp.dot(x_ref[...], w_ref[...],
                            preferred_element_type=jnp.float32)

    @pl.when(pl.program_id(2) == pl.num_programs(2) - 1)
    def _():
        o_ref[...] = (acc_ref[...] + b_ref[...]).astype(o_ref.dtype)


def _matmul_bias(x, w, b, *, out_dtype, chip_vmem,
                 tm_pref=256, tn_pref=256, tk_pref=512):
    """x: (M, K), w: (K, N), b: (1, N) -> (M, N) in out_dtype (f32 accumulate)."""
    M, K = x.shape
    K2, N = w.shape
    assert K == K2 and b.shape == (1, N)

    tm, Mp = _tile_and_pad(M, tm_pref)
    tn, Np = _tile_and_pad(N, tn_pref)
    tk, Kp = _tile_and_pad(K, tk_pref)
    if Mp != M or Kp != K:
        x = jnp.pad(x, ((0, Mp - M), (0, Kp - K)))
    if Kp != K or Np != N:
        w = jnp.pad(w, ((0, Kp - K), (0, Np - N)))
    if Np != N:
        b = jnp.pad(b, ((0, 0), (0, Np - N)))

    grid = (Mp // tm, Np // tn, Kp // tk)

    x_it, w_it, o_it = _itemsize(x.dtype), _itemsize(w.dtype), _itemsize(out_dtype)
    need = (2 * tm * tk * x_it + 2 * tk * tn * w_it   # double-buffered inputs
            + 2 * tm * tn * o_it                      # double-buffered output
            + tm * tn * 4                             # f32 accumulator
            + 2 * tn * 4)                             # bias

    out = pl.pallas_call(
        _matmul_bias_kernel,
        out_shape=jax.ShapeDtypeStruct((Mp, Np), out_dtype),
        grid_spec=pltpu.PrefetchScalarGridSpec(
            num_scalar_prefetch=0,
            grid=grid,
            in_specs=[
                pl.BlockSpec((tm, tk), lambda i, j, k: (i, k)),
                pl.BlockSpec((tk, tn), lambda i, j, k: (k, j)),
                pl.BlockSpec((1, tn), lambda i, j, k: (0, j)),
            ],
            out_specs=pl.BlockSpec((tm, tn), lambda i, j, k: (i, j)),
            scratch_shapes=[pltpu.VMEM((tm, tn), jnp.float32)],
        ),
        compiler_params=pltpu.CompilerParams(
            dimension_semantics=("parallel", "parallel", "arbitrary"),
            vmem_limit_bytes=_vmem_limit_bytes(need, chip_vmem),
        ),
    )(x, w, b)

    if Mp != M or Np != N:
        out = out[:M, :N]
    return out


# ---------------------------------------------------------------------------
# (2) sequential LSTM recurrence, TQ timesteps per grid step (batch-major)
# ---------------------------------------------------------------------------

def _sigmoid_t(x):
    # sigmoid(x) = 0.5 * (1 + tanh(0.5 x)): one EUP push instead of exp+recip.
    return 0.5 * jnp.tanh(0.5 * x) + 0.5


def _lstm_recurrent_kernel(pregates_ref, whh_ref, h0c0_ref,
                           h_all_ref, hN_ref, cN_ref,
                           h_scr, c_scr, *, hidden_size, tq, seq_len):
    """One grid step == TQ LSTM timesteps.  Grid = (batch_shards, n_chunks);
    the chunk axis (1) is sequential ('arbitrary'), the shard axis is parallel.

    pregates_ref : (Bs, TQ, 4H)       x@W_ih + b (precomputed, streamed in)
    whh_ref      : (H, 4H)            recurrent weights (resident)
    h0c0_ref     : (2, Bs, H) f32     initial state
    h_all_ref    : (Bs, TQ, H)        per-step hidden states (dense block store)
    h_scr/c_scr  : (Bs, H) f32 VMEM   recurrent carry across chunk iterations
    """
    H = hidden_size
    chunk = pl.program_id(1)
    padded = (seq_len % tq) != 0

    @pl.when(chunk == 0)
    def _():
        h_scr[...] = h0c0_ref[0]
        c_scr[...] = h0c0_ref[1]

    whh = whh_ref[...]                 # resident; only h@W_hh per step
    mm_dtype = whh.dtype

    def step(i, carry):
        h_prev, c_prev = carry
        pre = pregates_ref[:, pl.ds(i, 1), :][:, 0, :].astype(jnp.float32)
        gates = pre + jnp.dot(h_prev.astype(mm_dtype), whh,
                              preferred_element_type=jnp.float32)   # (Bs, 4H)

        # PyTorch gate order [i, f, g, o]; elementwise math stays f32.
        i_g = _sigmoid_t(gates[:, 0 * H:1 * H])
        f_g = _sigmoid_t(gates[:, 1 * H:2 * H])
        g_g = jnp.tanh(gates[:, 2 * H:3 * H])
        o_g = _sigmoid_t(gates[:, 3 * H:4 * H])

        c_new = f_g * c_prev + i_g * g_g
        h_new = o_g * jnp.tanh(c_new)

        if padded:
            # ragged tail (only reached when tq does not divide T): padded
            # steps must not advance the state.
            valid = (chunk * tq + i) < seq_len
            h_new = jnp.where(valid, h_new, h_prev)
            c_new = jnp.where(valid, c_new, c_prev)

        h_all_ref[:, pl.ds(i, 1), :] = h_new[:, None, :].astype(h_all_ref.dtype)
        return h_new, c_new

    h_fin, c_fin = lax.fori_loop(0, tq, step, (h_scr[...], c_scr[...]),
                                 unroll=True)
    h_scr[...] = h_fin
    c_scr[...] = c_fin
    # Write final state every chunk (cheap (Bs,H) VMEM store); avoids relying
    # on write-only-in-last-iteration semantics for the resident output block.
    hN_ref[...] = h_fin.astype(hN_ref.dtype)
    cN_ref[...] = c_fin.astype(cN_ref.dtype)


def _choose_tq(T, Bs, H, tq_pref, preg_item, h_item, chip_vmem, whh_bytes):
    """Pick a VMEM-aware, sublane-aligned chunk length; prefer tq | T (no pad)."""
    budget = min(chip_vmem // 2, 48 << 20) - whh_bytes - 8 * Bs * H * 4
    per_step = Bs * (4 * H * preg_item + H * h_item)
    tq_vmem = max(8, budget // max(1, 2 * per_step))
    tq_cap = int(min(tq_pref, tq_vmem, T))
    if tq_cap >= T:
        return T, T                      # single full-extent chunk, no padding
    best = 0
    d = (tq_cap // 8) * 8
    while d >= 8:                        # largest multiple-of-8 divisor of T
        if T % d == 0:
            best = d
            break
        d -= 8
    if best * 2 >= tq_cap:
        return best, T                   # divisor close enough -> no padding
    tq = max(8, (tq_cap // 8) * 8)       # ragged: pad + mask the tail in-kernel
    T_pad = ((T + tq - 1) // tq) * tq
    return tq, T_pad


def _lstm_recurrence(pregates_bm, w_hh, h0, c0, *, tq_pref, batch_shards,
                     h_all_dtype, chip_vmem):
    """pregates_bm: (B, T, 4H), w_hh: (H, 4H). Returns h_all (B,T,H), h_n, c_n."""
    B, T, G = pregates_bm.shape
    H = G // 4
    assert G == 4 * H

    # Batch sharding across TensorCores (v7x): shards must be sublane-aligned.
    S = batch_shards
    if S < 1 or B % S != 0 or (S > 1 and (B // S) % 8 != 0):
        S = 1
    Bs = B // S

    preg_item = _itemsize(pregates_bm.dtype)
    h_item = _itemsize(h_all_dtype)
    whh_bytes = w_hh.size * _itemsize(w_hh.dtype)
    tq, T_pad = _choose_tq(T, Bs, H, tq_pref, preg_item, h_item,
                           chip_vmem, whh_bytes)
    n_chunks = T_pad // tq
    if T_pad != T:
        pregates_bm = jnp.pad(pregates_bm, ((0, 0), (0, T_pad - T), (0, 0)))
    h0c0 = jnp.stack([h0, c0], axis=0)                    # (2, B, H)

    kernel = functools.partial(_lstm_recurrent_kernel,
                               hidden_size=H, tq=tq, seq_len=T)

    need = (whh_bytes                                    # resident W_hh
            + 2 * Bs * tq * G * preg_item                # pregate blocks (dbuf)
            + 2 * Bs * tq * H * h_item                   # h_all blocks (dbuf)
            + 8 * Bs * H * 4)                            # h0c0/carries/hN/cN

    h_all, h_n, c_n = pl.pallas_call(
        kernel,
        out_shape=(
            jax.ShapeDtypeStruct((B, T_pad, H), h_all_dtype),
            jax.ShapeDtypeStruct((B, H), jnp.float32),
            jax.ShapeDtypeStruct((B, H), jnp.float32),
        ),
        grid_spec=pltpu.PrefetchScalarGridSpec(
            num_scalar_prefetch=0,
            grid=(S, n_chunks),
            in_specs=[
                pl.BlockSpec((Bs, tq, G), lambda s, c: (s, c, 0)),  # pregates
                pl.BlockSpec((H, G), lambda s, c: (0, 0)),          # W_hh resident
                pl.BlockSpec((2, Bs, H), lambda s, c: (0, s, 0)),   # h0/c0
            ],
            out_specs=[
                pl.BlockSpec((Bs, tq, H), lambda s, c: (s, c, 0)),  # h_all chunk
                pl.BlockSpec((Bs, H), lambda s, c: (s, 0)),         # h_n
                pl.BlockSpec((Bs, H), lambda s, c: (s, 0)),         # c_n
            ],
            scratch_shapes=[
                pltpu.VMEM((Bs, H), jnp.float32),    # h carry
                pltpu.VMEM((Bs, H), jnp.float32),    # c carry
            ],
        ),
        compiler_params=pltpu.CompilerParams(
            dimension_semantics=("parallel", "arbitrary"),  # true recurrence
            vmem_limit_bytes=_vmem_limit_bytes(need, chip_vmem),
        ),
    )(pregates_bm, w_hh, h0c0)

    if T_pad != T:
        h_all = h_all[:, :T]
    return h_all, h_n, c_n


# ---------------------------------------------------------------------------
# full forward
# ---------------------------------------------------------------------------

def embedded_lm_forward(params, x_emb, h_old=None, *, tq=32,
                        matmul_dtype=jnp.bfloat16, batch_shards=1):
    """Pallas forward of EmbeddedLM (nlayers=1), batch-major throughout.

    x_emb: (B, T, E) float32 (batch_first, like PyTorch).
    h_old: optional tuple (h0, c0), each (1, B, H).
    matmul_dtype: MXU operand / streamed-intermediate dtype (default bf16;
      pass jnp.float32 for tight numerics). State & nonlinearities stay f32.
    batch_shards: set 2 on v7x when (B//2) % 8 == 0 to use both TensorCores
      during the recurrence (silently falls back to 1 otherwise).
    Returns (logits (B, T, V), (h_n (1, B, H), c_n (1, B, H))).
    """
    B, T, E = x_emb.shape
    H = params["w_hh"].shape[0]
    V = params["w_out"].shape[1]
    mm_dt = jax.dtypes.canonicalize_dtype(matmul_dtype)
    act_dt = mm_dt          # streamed intermediates carried in the matmul dtype

    chip_vmem = _chip_vmem_bytes()
    big_vmem = chip_vmem >= (96 << 20)          # v5e/v6e (128 MiB) vs v7x (64 MiB)
    tm_pref = tn_pref = 512 if big_vmem else 256
    tk_pref = 512

    if h_old is None:
        h0 = jnp.zeros((B, H), jnp.float32)
        c0 = jnp.zeros((B, H), jnp.float32)
    else:
        h0 = h_old[0][0].astype(jnp.float32)
        c0 = h_old[1][0].astype(jnp.float32)

    w_ih = params["w_ih"].astype(mm_dt)             # (E, 4H)
    w_hh = params["w_hh"].astype(mm_dt)             # (H, 4H)
    b_g = params["b_gates"].astype(jnp.float32)     # (1, 4H)
    w_out = params["w_out"].astype(mm_dt)           # (H, V)
    b_out = params["b_out"].astype(jnp.float32)     # (1, V)

    # (1) hoisted input matmul over all B*T rows -- batch-major, no transpose.
    x2d = x_emb.reshape(B * T, E).astype(mm_dt)
    pregates = _matmul_bias(x2d, w_ih, b_g, out_dtype=act_dt, chip_vmem=chip_vmem,
                            tm_pref=tm_pref, tn_pref=tn_pref, tk_pref=tk_pref)
    pregates = pregates.reshape(B, T, 4 * H)

    # (2) sequential recurrence, VMEM-aware TQ timesteps per grid step.
    h_all, h_n, c_n = _lstm_recurrence(pregates, w_hh, h0, c0,
                                       tq_pref=max(1, tq),
                                       batch_shards=batch_shards,
                                       h_all_dtype=act_dt,
                                       chip_vmem=chip_vmem)

    # nn.Dropout in eval mode == identity (applied to LSTM output before Linear).

    # (3) vocab projection -- batch-major, logits land directly as (B, T, V).
    logits = _matmul_bias(h_all.reshape(B * T, H), w_out, b_out,
                          out_dtype=jnp.float32, chip_vmem=chip_vmem,
                          tm_pref=tm_pref, tn_pref=tn_pref, tk_pref=tk_pref)
    logits = logits.reshape(B, T, V)

    return logits, (h_n[None], c_n[None])


# ---------------------------------------------------------------------------
# params + pure-JAX reference
# ---------------------------------------------------------------------------

def init_params(key, vocab_size, hidden_size, embedding_size):
    """Deterministic init matching PyTorch LSTM/Linear default U(-1/sqrt(H), 1/sqrt(H))."""
    E, H, V = embedding_size, hidden_size, vocab_size
    k = 1.0 / np.sqrt(H)
    ks = jax.random.split(key, 8)
    u = lambda kk, shape: jax.random.uniform(kk, shape, jnp.float32, -k, k)
    w_ih = u(ks[0], (4 * H, E))      # PyTorch weight_ih_l0
    w_hh = u(ks[1], (4 * H, H))      # PyTorch weight_hh_l0
    b_ih = u(ks[2], (4 * H,))
    b_hh = u(ks[3], (4 * H,))
    w_out = u(ks[4], (V, H))         # PyTorch Linear weight
    b_out = u(ks[5], (V,))
    return {
        "w_ih": w_ih.T,                          # (E, 4H)
        "w_hh": w_hh.T,                          # (H, 4H)
        "b_gates": (b_ih + b_hh)[None, :],       # (1, 4H)
        "w_out": w_out.T,                        # (H, V)
        "b_out": b_out[None, :],                 # (1, V)
    }


def _reference_forward(params, x_emb, h0, c0):
    """Pure-JAX reference (lax.scan) for correctness checking."""
    H = params["w_hh"].shape[0]

    def step(carry, x_t):
        h, c = carry
        gates = x_t @ params["w_ih"] + h @ params["w_hh"] + params["b_gates"]
        i = jax.nn.sigmoid(gates[:, 0 * H:1 * H])
        f = jax.nn.sigmoid(gates[:, 1 * H:2 * H])
        g = jnp.tanh(gates[:, 2 * H:3 * H])
        o = jax.nn.sigmoid(gates[:, 3 * H:4 * H])
        c_new = f * c + i * g
        h_new = o * jnp.tanh(c_new)
        logits_t = h_new @ params["w_out"] + params["b_out"]
        return (h_new, c_new), logits_t

    x_tm = jnp.transpose(x_emb, (1, 0, 2))
    (h_n, c_n), logits_tm = lax.scan(step, (h0, c0), x_tm)
    return jnp.transpose(logits_tm, (1, 0, 2)), h_n, c_n


if __name__ == "__main__":
    # Small shapes consistent with the module's forward:
    B, T = 2, 16             # batch, sequence length
    E, H, V = 32, 32, 64     # embedding_size (=hidden), hidden_size, vocab_size

    key = jax.random.PRNGKey(0)
    k_param, k_x, k_x2 = jax.random.split(key, 3)
    params = init_params(k_param, vocab_size=V, hidden_size=H, embedding_size=E)

    x_emb = jax.random.normal(k_x, (B, T, E), jnp.float32)
    h_old = (jnp.zeros((1, B, H), jnp.float32), jnp.zeros((1, B, H), jnp.float32))

    ref_logits, ref_h, ref_c = _reference_forward(params, x_emb, h_old[0][0], h_old[1][0])

    # (a) f32 matmul path, single recurrent chunk (tq >= T): tight check.
    logits, (h_n, c_n) = embedded_lm_forward(params, x_emb, h_old,
                                             matmul_dtype=jnp.float32)
    logits = jax.block_until_ready(logits)
    np.testing.assert_allclose(np.asarray(logits), np.asarray(ref_logits), rtol=2e-3, atol=2e-3)
    np.testing.assert_allclose(np.asarray(h_n[0]), np.asarray(ref_h), rtol=2e-3, atol=2e-3)
    np.testing.assert_allclose(np.asarray(c_n[0]), np.asarray(ref_c), rtol=2e-3, atol=2e-3)
    assert logits.shape == (B, T, V)
    assert h_n.shape == (1, B, H) and c_n.shape == (1, B, H)

    # (b) multi-chunk sequential path (tq=8 -> 2 chunks); batch_shards=2
    #     exercises the shard guard (falls back to 1: B//2 not sublane-aligned).
    logits2, (h_n2, c_n2) = embedded_lm_forward(params, x_emb, h_old, tq=8,
                                                matmul_dtype=jnp.float32,
                                                batch_shards=2)
    jax.block_until_ready(logits2)
    np.testing.assert_allclose(np.asarray(logits2), np.asarray(ref_logits), rtol=2e-3, atol=2e-3)
    np.testing.assert_allclose(np.asarray(h_n2[0]), np.asarray(ref_h), rtol=2e-3, atol=2e-3)
    np.testing.assert_allclose(np.asarray(c_n2[0]), np.asarray(ref_c), rtol=2e-3, atol=2e-3)

    # (c) ragged sequence (T=13, tq=8): padded + masked-tail recurrence path.
    T2 = 13
    x_emb2 = jax.random.normal(k_x2, (B, T2, E), jnp.float32)
    ref_logits2, ref_h2, ref_c2 = _reference_forward(params, x_emb2,
                                                     h_old[0][0], h_old[1][0])
    logits3, (h_n3, c_n3) = embedded_lm_forward(params, x_emb2, h_old, tq=8,
                                                matmul_dtype=jnp.float32)
    jax.block_until_ready(logits3)
    np.testing.assert_allclose(np.asarray(logits3), np.asarray(ref_logits2), rtol=2e-3, atol=2e-3)
    np.testing.assert_allclose(np.asarray(h_n3[0]), np.asarray(ref_h2), rtol=2e-3, atol=2e-3)
    np.testing.assert_allclose(np.asarray(c_n3[0]), np.asarray(ref_c2), rtol=2e-3, atol=2e-3)

    # (d) default bf16 perf path (also covers h_old=None): loose sanity check.
    logits4, (h_n4, c_n4) = embedded_lm_forward(params, x_emb)
    jax.block_until_ready(logits4)
    np.testing.assert_allclose(np.asarray(logits4), np.asarray(ref_logits), rtol=2e-1, atol=2e-1)
    np.testing.assert_allclose(np.asarray(h_n4[0]), np.asarray(ref_h), rtol=2e-1, atol=2e-1)
    assert logits4.shape == (B, T, V)

    print("KERNEL_OK")
</pallas_src>

<mosaic_0001>
module attributes {stable_mosaic.version = 11 : i64} {
  func.func @_matmul_bias_kernel(%arg0: i32, %arg1: i32, %arg2: i32, %arg3: memref<32x32xf32, #tpu.memory_space<vmem>>, %arg4: memref<32x128xf32, #tpu.memory_space<vmem>>, %arg5: memref<1x128xf32, #tpu.memory_space<vmem>>, %arg6: memref<32x128xf32, #tpu.memory_space<vmem>>, %arg7: memref<32x128xf32, #tpu.memory_space<vmem>>) attributes {dimension_semantics = [#tpu.dimension_semantics<parallel>, #tpu.dimension_semantics<parallel>, #tpu.dimension_semantics<arbitrary>], iteration_bounds = array<i64: 1, 1, 1>, scalar_prefetch = 0 : i64, scratch_operands = 1 : i64, tpu.core_type = #tpu.core_type<tc>, window_params = [{transform_indices = @transform_0, window_bounds = array<i64: 32, 32>}, {transform_indices = @transform_1, window_bounds = array<i64: 32, 128>}, {transform_indices = @transform_2, window_bounds = array<i64: 1, 128>}, {transform_indices = @transform_3, window_bounds = array<i64: 32, 128>}]} {
    %c0_i32 = arith.constant 0 : i32
    %0 = arith.cmpi eq, %arg2, %c0_i32 : i32
    %1 = arith.extui %0 : i1 to i32
    %c0_i32_0 = arith.constant 0 : i32
    %2 = arith.cmpi ne, %1, %c0_i32_0 : i32
    scf.if %2 {
      %cst_10 = arith.constant 0.000000e+00 : f32
      %12 = vector.broadcast %cst_10 : f32 to vector<32x128xf32>
      %c0_11 = arith.constant 0 : index
      %c0_12 = arith.constant 0 : index
      %13 = vector.load %arg7[%c0_11, %c0_12] : memref<32x128xf32, #tpu.memory_space<vmem>>, vector<32x128xf32>
      tpu.vector_store %arg7[%c0_11, %c0_12], %12 {strides = array<i32>} : memref<32x128xf32, #tpu.memory_space<vmem>>, vector<32x128xf32>,
    } else {
    }
    %c0 = arith.constant 0 : index
    %c0_1 = arith.constant 0 : index
    %3 = vector.load %arg7[%c0, %c0_1] : memref<32x128xf32, #tpu.memory_space<vmem>>, vector<32x128xf32>
    %c0_2 = arith.constant 0 : index
    %c0_3 = arith.constant 0 : index
    %4 = vector.load %arg3[%c0_2, %c0_3] : memref<32x32xf32, #tpu.memory_space<vmem>>, vector<32x32xf32>
    %c0_4 = arith.constant 0 : index
    %c0_5 = arith.constant 0 : index
    %5 = vector.load %arg4[%c0_4, %c0_5] : memref<32x128xf32, #tpu.memory_space<vmem>>, vector<32x128xf32>
    %cst = arith.constant dense<0.000000e+00> : vector<32x128xf32>
    %6 = tpu.matmul %4, %5, %cst {dimension_numbers = #tpu.dot_dimension_numbers<[1], [0], [0], [1], [0, 0, 1, 1], [], []>} : vector<32x32xf32>, vector<32x128xf32>, vector<32x128xf32> -> vector<32x128xf32>
    %7 = arith.addf %3, %6 : vector<32x128xf32>
    %c0_6 = arith.constant 0 : index
    %c0_7 = arith.constant 0 : index
    %8 = vector.load %arg7[%c0_6, %c0_7] : memref<32x128xf32, #tpu.memory_space<vmem>>, vector<32x128xf32>
    tpu.vector_store %arg7[%c0_6, %c0_7], %7 {strides = array<i32>} : memref<32x128xf32, #tpu.memory_space<vmem>>, vector<32x128xf32>,
    %c0_i32_8 = arith.constant 0 : i32
    %9 = arith.cmpi eq, %arg2, %c0_i32_8 : i32
    %10 = arith.extui %9 : i1 to i32
    %c0_i32_9 = arith.constant 0 : i32
    %11 = arith.cmpi ne, %10, %c0_i32_9 : i32
    scf.if %11 {
      %c0_10 = arith.constant 0 : index
      %c0_11 = arith.constant 0 : index
      %12 = vector.load %arg7[%c0_10, %c0_11] : memref<32x128xf32, #tpu.memory_space<vmem>>, vector<32x128xf32>
      %c0_12 = arith.constant 0 : index
      %c0_13 = arith.constant 0 : index
      %13 = vector.load %arg5[%c0_12, %c0_13] : memref<1x128xf32, #tpu.memory_space<vmem>>, vector<1x128xf32>
      %14 = vector.broadcast %13 : vector<1x128xf32> to vector<32x128xf32>
      %15 = arith.addf %12, %14 : vector<32x128xf32>
      %c0_14 = arith.constant 0 : index
      %c0_15 = arith.constant 0 : index
      %16 = vector.load %arg6[%c0_14, %c0_15] : memref<32x128xf32, #tpu.memory_space<vmem>>, vector<32x128xf32>
      tpu.vector_store %arg6[%c0_14, %c0_15], %15 {strides = array<i32>} : memref<32x128xf32, #tpu.memory_space<vmem>>, vector<32x128xf32>,
    } else {
    }
    return
  }
  func.func @transform_0(%arg0: i32, %arg1: i32, %arg2: i32) -> (i32, i32) {
    %c0_i32 = arith.constant 0 : i32
    return %arg0, %arg2 : i32, i32
  }
  func.func @transform_1(%arg0: i32, %arg1: i32, %arg2: i32) -> (i32, i32) {
    %c0_i32 = arith.constant 0 : i32
    return %arg2, %arg1 : i32, i32
  }
  func.func @transform_2(%arg0: i32, %arg1: i32, %arg2: i32) -> (i32, i32) {
    %c0_i32 = arith.constant 0 : i32
    %c0_i32_0 = arith.constant 0 : i32
    return %c0_i32, %arg1 : i32, i32
  }
  func.func @transform_3(%arg0: i32, %arg1: i32, %arg2: i32) -> (i32, i32) {
    %c0_i32 = arith.constant 0 : i32
    return %arg0, %arg1 : i32, i32
  }
}

</mosaic_0001>

<bundles_post_ra>
// kernel: tpu_custom_call.1
= control target key start
LH: loop header
LB: loop body
LE: loop exit
PB: predicated region body
PF: predicated region fallthrough
CT: control target
= control target key end

     0   :  { %8 = vsyncpa [#allocation4], 0  ;;  %s402_s0 = inlined_call_operand.hbm [shape: f32[32,32], index: 0, kind: input, shape index: {}]   ;;  %s403_s1 = inlined_call_operand.hbm [shape: f32[32,128], index: 1, kind: input, shape index: {}]   ;;  %s404_s2 = inlined_call_operand.vmem [shape: f32[1,128], index: 2, kind: input, shape index: {}]   ;;  %s405_s3 = inlined_call_operand.hbm [shape: f32[32,128], index: 3, kind: output, shape index: {}]  }
   0x1   :  { %9 = vsyncpa [#allocation7], 0 }
   0x2   :  { %10 = vsyncpa [#allocation5], 0  ;;  %s325_s12 = smov [#allocation3]   ;;  %s253_s16 = scalar_lea.hbm %s402_s0, 512 }
   0x3   :  { %s16_s13 = sshll.u32 %s325_s12, 4  ;;  %p254_p0 = scmp.ne.s32.totalorder %s402_s0, %s253_s16  ;;  %s17_s13 = int_to_ptr.vmem [resolvable:$true] %s16_s13 }
   0x4   :  { %p257_p1 = scmp.lt.u32.totalorder %s253_s16, %s402_s0 }
   0x6   :  { %p259_p2 = pnand %p257_p1, %p254_p0 }
   0x8   :  { %262 = shalt.err (!%p259_p2)
}
   0x9   :  { %s263_s21 = scalar_lea.vmem %s17_s13, 512  ;;  %p268_p4 = scmp.lt.s32.totalorder %s17_s13, %s17_s13 }
   0xa   :  { %p264_p3 = scmp.ne.s32.totalorder %s17_s13, %s263_s21  ;;  %p269_p5 = scmp.lt.s32.totalorder %s263_s21, %s263_s21 }
   0xc   :  { %p270_p6 = por %p269_p5, %p268_p4 }
   0xe   :  { %p271_p7 = pnand %p270_p6, %p264_p3 }
  0x10   :  { %274 = shalt.err (!%p271_p7)
}
  0x11   :  { %s326_s22 = smov 128   ;;  %s327_s23 = smov 8  }
  0x12   :  { %22 = dma.hbm_to_vmem [thread:$0]  %s402_s0, 512, %s17_s13, [#allocation4], %s326_s22, %s326_s22, %s327_s23  }
  0x13   :  { %s328_s26 = smov [#allocation6]   ;;  %s275_s30 = scalar_lea.hbm %s403_s1, 512 }
  0x14   :  { %s28_s27 = sshll.u32 %s328_s26, 4  ;;  %p276_p8 = scmp.ne.s32.totalorder %s403_s1, %s275_s30  ;;  %s29_s27 = int_to_ptr.vmem [resolvable:$true] %s28_s27 }
  0x15   :  { %p279_p9 = scmp.lt.u32.totalorder %s275_s30, %s403_s1 }
  0x17   :  { %p281_p10 = pnand %p279_p9, %p276_p8 }
  0x19   :  { %284 = shalt.err (!%p281_p10)
}
  0x1a   :  { %s285_s8 = scalar_lea.vmem %s29_s27, 512  ;;  %p290_p12 = scmp.lt.s32.totalorder %s29_s27, %s29_s27 }
  0x1b   :  { %p286_p11 = scmp.ne.s32.totalorder %s29_s27, %s285_s8  ;;  %p291_p13 = scmp.lt.s32.totalorder %s285_s8, %s285_s8 }
  0x1d   :  { %p292_p0 = por %p291_p13, %p290_p12 }
  0x1f   :  { %p293_p1 = pnand %p292_p0, %p286_p11 }
  0x21   :  { %296 = shalt.err (!%p293_p1)
}
  0x22   :  { %34 = dma.hbm_to_vmem [thread:$0]  %s403_s1, 512, %s29_s27, [#allocation7], %s326_s22, %s326_s22, %s327_s23  }
  0x23   :  { %319 = dma.done.wait [#allocation4], 512  }
  0x24   :  { %320 = vsyncadd [#allocation4], 4294966784 }
  0x25   :  { %321 = dma.done.wait [#allocation7], 512  }
  0x26   :  { %322 = vsyncadd [#allocation7], 4294966784  ;;  %vm63_vm0 = vcmask 261120   ;;  %v59_v0 = vld [vmem:[#allocation6] sm:$0xff]  ;;  %v60_v1 = vld [vmem:[#allocation6 + $0x8] sm:$0xff]  ;;  %s329_s11 = smov [#allocation8]  }
  0x27   :  { %v61_v2 = vld [vmem:[#allocation6 + $0x10] sm:$0xff]  ;;  %v236_v3 = vpack.c.bf16 %v60_v1, %v59_v0  ;;  %v62_v4 = vld [vmem:[#allocation6 + $0x18] sm:$0xff]  ;;  %v55_v5 = vld [vmem:[#allocation3] sm:$0xff]  ;;  %s196_s12 = sshll.u32 %s329_s11, 4  ;;  %s197_s12 = int_to_ptr.vmem [resolvable:$true] %s196_s12 }
  0x28   :  { %v57_v6 = vld [vmem:[#allocation3 + $0x10] sm:$0xff]  ;;  %v240_v7 = vpack.c.bf16 %v62_v4, %v61_v2  ;;  %230 = vmatprep.mubr.msk.f32.mxu0 %vm63_vm0, %v55_v5  ;;  %v56_v8 = vld [vmem:[#allocation3 + $0x8] sm:$0xff]  ;;  %v58_v9 = vld [vmem:[#allocation3 + $0x18] sm:$0xff]  ;;  %s297_s13 = scalar_lea.vmem %s197_s12, 512  ;;  %p302_p3 = scmp.lt.s32.totalorder %s197_s12, %s197_s12 }
  0x29   :  { %233 = vmatprep.mubr.msk.f32.mxu1 %vm63_vm0, %v57_v6  ;;  %237 = vmatprep.subr.bf16.mxu0 %v236_v3  ;;  %v213_v10 = vld [vmem:[%s404_s2] ss:$0 sm:$0xff]  ;;  %p298_p2 = scmp.ne.s32.totalorder %s197_s12, %s297_s13  ;;  %p303_p4 = scmp.lt.s32.totalorder %s297_s13, %s297_s13 }
  0x2a   :  { %244 = vmatprep.subr.bf16.mxu1 %v236_v3  ;;  %239 = vmatpush3.bf16.msra.mxu0 %v236_v3 }
  0x2b   :  { %246 = vmatpush3.bf16.msra.mxu1 %v236_v3  ;;  %241 = vmatprep.subr.bf16.mxu0 %v240_v7  ;;  %p304_p5 = por %p303_p4, %p302_p3 }
  0x2c   :  { %245 = vmatprep.subr.bf16.mxu1 %v240_v7 }
  0x2d   :  { %p305_p6 = pnand %p304_p5, %p298_p2 }
  0x2e   :  { %243 = vmatpush3.bf16.msra.mxu0 %v240_v7 }
  0x2f   :  { %247 = vmatpush3.bf16.msra.mxu1 %v240_v7 }
  0x31   :  { %231 = vmatmul.mubr.msk.f32.vlgmr.msra.gmra.mrb[0].mxu0 %vm63_vm0, %v56_v8 }
  0x32   :  { %234 = vmatmul.mubr.msk.f32.vlgmr.msra.gmra.mrb[0].mxu1 %vm63_vm0, %v58_v9 }
 0x104   :  { %v232_v11 = vpop.f32.mrb[0].mxu0 }
 0x105   :  { %v235_v12 = vpop.f32.mrb[0].mxu1  ;;  %v184_v13 = vadd.f32 %v232_v11, %v213_v10  ;;  %v142_v15 = vpop.f32.mrb[1].mxu0 }
 0x106   :  { %v186_v14 = vadd.f32 %v235_v12, %v213_v10  ;;  %v152_v16 = vpop.f32.mrb[1].mxu1  ;;  %v183_v17 = vadd.f32 %v213_v10, %v142_v15 }
 0x107   :  { %v185_v18 = vadd.f32 %v213_v10, %v152_v16  ;;  %188 = vst [vmem:[#allocation8 + $0x8] sm:$0xff] %v184_v13 }
 0x108   :  { %190 = vst [vmem:[#allocation8 + $0x18] sm:$0xff] %v186_v14  ;;  %187 = vst [vmem:[#allocation8] sm:$0xff] %v183_v17 }
 0x109   :  { %189 = vst [vmem:[#allocation8 + $0x10] sm:$0xff] %v185_v18 }
 0x10a   :  { %308 = shalt.err (!%p305_p6)
}
 0x10b   :  { %s309_s15 = scalar_lea.hbm %s405_s3, 512 }
 0x10c   :  { %p310_p7 = scmp.ne.s32.totalorder %s405_s3, %s309_s15  ;;  %p313_p8 = scmp.lt.u32.totalorder %s309_s15, %s405_s3 }
 0x10e   :  { %p315_p9 = pnand %p313_p8, %p310_p7 }
 0x110   :  { %318 = shalt.err (!%p315_p9)
}
 0x111   :  { %202 = dma.vmem_to_hbm [thread:$0]  %s197_s12, 512, %s405_s3, [#allocation5], %s326_s22, %s326_s22, %s327_s23  }
 0x112   :  { %323 = dma.done.wait [#allocation5], 512  }
 0x113   :  { %324 = vsyncadd [#allocation5], 4294966784 }
 0x114   :  { %206 = vsyncpa [#allocation4], 1 }
 0x115   :  { %207 = vsyncpa [#allocation7], 1 }
 0x116   :  { %208 = vsyncpa [#allocation5], 1 }

</bundles_post_ra>
